<compile_context>
chip_gen: v7x
topology: tpu7x:2x2x1
jax: 0.10.0
libtpu: 0.0.40
codegen_flags: <defaults>
</compile_context>

<pallas_src>
from functools import partial

import jax
import jax.numpy as jnp
from jax.experimental import pallas as pl
from jax.experimental.pallas import tpu as pltpu


# ---------------------------------------------------------------------------
# helpers
# ---------------------------------------------------------------------------

def _round_up(x, m):
    return (x + m - 1) // m * m


def _pick_tile(dim, target):
    """Largest multiple of 128 that divides `dim` and is <= target; else `dim`."""
    if dim <= 128:
        return dim
    best = None
    t = 128
    while t <= min(dim, target):
        if dim % t == 0:
            best = t
        t += 128
    return best if best is not None else dim


def _vmem_budget_bytes(frac=0.8, fallback=48 * 1024 * 1024):
    """~80% of physical VMEM per core; safe fallback if the query is missing."""
    try:
        cap = int(pltpu.get_tpu_info().vmem_capacity_bytes)
        return int(cap * frac)
    except Exception:
        return fallback


def _fit_tiles(B, K, N, tk_target, tn_target, tile_budget_bytes,
               buffers=2, w_itemsize=2):
    """Pick (tk, tn) near the targets such that the VMEM footprint fits."""
    tk = _pick_tile(K, tk_target)
    tn = _pick_tile(N, tn_target)

    def footprint(tk_, tn_):
        w = tk_ * tn_ * w_itemsize * buffers      # streamed weight buffers
        xb = B * K * 2                            # resident bf16 activation
        acc = B * tn_ * 4                         # f32 accumulator scratch
        out = B * tn_ * 2 * 2                     # double-buffered bf16 out
        bias = tn_ * 4 * 2                        # double-buffered f32 bias
        return w + xb + acc + out + bias

    for _ in range(32):
        if footprint(tk, tn) <= tile_budget_bytes:
            break
        new_tk, new_tn = tk, tn
        if tk >= tn and tk > 128:
            new_tk = _pick_tile(K, max(128, tk // 2))
        elif tn > 128:
            new_tn = _pick_tile(N, max(128, tn // 2))
        if (new_tk, new_tn) == (tk, tn):
            break
        tk, tn = new_tk, new_tn
    return tk, tn


# ---------------------------------------------------------------------------
# kernel 1: tiled, pipelined  y = relu(x @ W + b)   (used for both big layers)
# ---------------------------------------------------------------------------

def _linear_relu_kernel(x_ref, w_ref, b_ref, o_ref, acc_ref, *, tk):
    k = pl.program_id(1)

    @pl.when(k == 0)
    def _init():
        acc_ref[...] = jnp.zeros_like(acc_ref)

    # Activation is grid-resident; slice the current K window in-kernel.
    start = pl.multiple_of(k * tk, tk)
    acc_ref[...] += jnp.dot(x_ref[:, pl.ds(start, tk)], w_ref[...],
                            preferred_element_type=jnp.float32)

    @pl.when(k == pl.num_programs(1) - 1)
    def _finalize():
        o_ref[...] = jnp.maximum(acc_ref[...] + b_ref[...], 0.0).astype(o_ref.dtype)


def _linear_relu(x, w, b, *, tk_target, tn_target, vmem_budget,
                 out_dtype=jnp.bfloat16):
    """relu(x @ w + b); weight streamed HBM->VMEM in (tk, tn) tiles."""
    B, K = x.shape
    K2, N = w.shape
    assert K == K2
    tk, tn = _fit_tiles(B, K, N, tk_target, tn_target,
                        int(vmem_budget * 0.75), buffers=2,
                        w_itemsize=jnp.dtype(w.dtype).itemsize)
    grid = (N // tn, K // tk)          # reduction axis (K) last

    cost = pl.CostEstimate(
        flops=int(2 * B * K * N),
        transcendentals=0,
        bytes_accessed=int(B * K * jnp.dtype(x.dtype).itemsize
                           + K * N * jnp.dtype(w.dtype).itemsize
                           + N * jnp.dtype(b.dtype).itemsize
                           + B * N * jnp.dtype(out_dtype).itemsize),
    )

    return pl.pallas_call(
        partial(_linear_relu_kernel, tk=tk),
        out_shape=jax.ShapeDtypeStruct((B, N), out_dtype),
        grid_spec=pltpu.PrefetchScalarGridSpec(
            num_scalar_prefetch=0,
            grid=grid,
            in_specs=[
                # activation: small -> keep resident across the whole grid
                pl.BlockSpec((B, K), lambda n, k: (0, 0)),
                # streamed weight tile: 2-deep buffering, big tiles
                pl.BlockSpec((tk, tn), lambda n, k: (k, n),
                             pipeline_mode=pl.Buffered(2)),
                # bias slice for the current output columns
                pl.BlockSpec((1, tn), lambda n, k: (0, n)),
            ],
            out_specs=pl.BlockSpec((B, tn), lambda n, k: (0, n)),
            scratch_shapes=[pltpu.VMEM((B, tn), jnp.float32)],
        ),
        compiler_params=pltpu.CompilerParams(
            dimension_semantics=("parallel", "arbitrary"),
            vmem_limit_bytes=int(vmem_budget),
        ),
        cost_estimate=cost,
    )(x, w, b)


# ---------------------------------------------------------------------------
# kernel 2: fused task heads + class head (all operands are small -> resident)
# ---------------------------------------------------------------------------

def _heads_class_kernel(out_ref, wh_ref, bh_ref, wco_ref, bc_ref, wch_ref,
                        fc_ref, heads_ref):
    out = out_ref[...]                                      # [B, H] bf16

    # Packed task heads: columns = [make | model | submodel | generation | 0pad]
    heads = jnp.dot(out, wh_ref[...],
                    preferred_element_type=jnp.float32) + bh_ref[...]

    # class_fc(concat([out, heads])) == out @ Wcl[:H] + heads @ Wcl[H:] + bcl
    fc = jnp.dot(out, wco_ref[...], preferred_element_type=jnp.float32)
    fc = fc + jnp.dot(heads, wch_ref[...], preferred_element_type=jnp.float32)
    fc = fc + bc_ref[...]

    fc_ref[...] = fc.astype(fc_ref.dtype)                   # lane-dense outputs
    heads_ref[...] = heads.astype(heads_ref.dtype)


# ---------------------------------------------------------------------------
# one-time parameter preparation (hoisted out of the forward)
# ---------------------------------------------------------------------------

def prepare_params(params):
    """Cast / pack / pad all weights once; the forward only consumes these."""
    (w1, b1, w2, b2,
     wmk, bmk, wmd, bmd, wsm, bsm, wgn, bgn,
     wcl, bcl) = params
    bf16, f32 = jnp.bfloat16, jnp.float32

    hidden = w2.shape[1]
    head_dims = (wmk.shape[1], wmd.shape[1], wsm.shape[1], wgn.shape[1])
    n_heads = int(sum(head_dims))
    n_cls = wcl.shape[1]
    assert wcl.shape[0] == hidden + n_heads

    p_heads = _round_up(n_heads, 128)
    p_cls = _round_up(n_cls, 128)

    # Pack the four task heads into one lane-dense weight / bias.
    wh = jnp.concatenate([wmk, wmd, wsm, wgn], axis=1)
    wh = jnp.pad(wh, ((0, 0), (0, p_heads - n_heads))).astype(bf16)
    bh = jnp.concatenate([bmk, bmd, bsm, bgn], axis=1)
    bh = jnp.pad(bh, ((0, 0), (0, p_heads - n_heads))).astype(f32)

    # Split + pad the class weight (shared-out block vs heads block).
    wco = jnp.pad(wcl[:hidden], ((0, 0), (0, p_cls - n_cls))).astype(bf16)
    wch = jnp.pad(wcl[hidden:], ((0, p_heads - n_heads),
                                 (0, p_cls - n_cls))).astype(f32)
    bc = jnp.pad(bcl, ((0, 0), (0, p_cls - n_cls))).astype(f32)

    arrays = dict(
        w1=w1.astype(bf16), b1=b1.astype(f32),
        w2=w2.astype(bf16), b2=b2.astype(f32),
        wh=wh, bh=bh, wco=wco, wch=wch, bc=bc,
    )
    meta = dict(hidden=int(hidden), head_dims=tuple(int(d) for d in head_dims),
                n_heads=n_heads, n_cls=int(n_cls),
                p_heads=int(p_heads), p_cls=int(p_cls))
    return arrays, meta


# ---------------------------------------------------------------------------
# full forward
# ---------------------------------------------------------------------------

def mtlnc_shared_fc_b_forward(x, prepped, *,
                              l1_tiles=(1792, 2048), l2_tiles=(2048, 2048)):
    arrays, meta = prepped
    bf16, f32 = jnp.bfloat16, jnp.float32

    B0 = x.shape[0]
    B = _round_up(B0, 8)               # sublane-multiple batch
    if B != B0:
        x = jnp.pad(x, ((0, B - B0), (0, 0)))
    x = x.astype(bf16)

    budget = _vmem_budget_bytes()

    # --- shared classifier MLP (streamed bf16 weights, f32 accumulation) ----
    h1 = _linear_relu(x, arrays["w1"], arrays["b1"],
                      tk_target=l1_tiles[0], tn_target=l1_tiles[1],
                      vmem_budget=budget)
    out = _linear_relu(h1, arrays["w2"], arrays["b2"],
                       tk_target=l2_tiles[0], tn_target=l2_tiles[1],
                       vmem_budget=budget)

    # --- fused task heads + class head --------------------------------------
    vmem = pl.BlockSpec(memory_space=pltpu.MemorySpace.VMEM)
    fc_pad, heads_pad = pl.pallas_call(
        _heads_class_kernel,
        out_shape=(jax.ShapeDtypeStruct((B, meta["p_cls"]), f32),
                   jax.ShapeDtypeStruct((B, meta["p_heads"]), f32)),
        in_specs=[vmem] * 6,
        out_specs=(vmem, vmem),
        compiler_params=pltpu.CompilerParams(vmem_limit_bytes=int(budget)),
    )(out, arrays["wh"], arrays["bh"], arrays["wco"], arrays["bc"], arrays["wch"])

    # --- slice the lane-dense slabs back into the five module outputs --------
    fc = fc_pad[:B0, :meta["n_cls"]]
    offs = 0
    head_outs = []
    for d in meta["head_dims"]:
        head_outs.append(heads_pad[:B0, offs:offs + d])
        offs += d
    return (fc, *head_outs)


# ---------------------------------------------------------------------------
# reference + test
# ---------------------------------------------------------------------------

def _init_linear(key, fan_in, fan_out):
    """PyTorch-default-style init: U(-1/sqrt(fan_in), 1/sqrt(fan_in))."""
    kw, kb = jax.random.split(key)
    bound = 1.0 / jnp.sqrt(jnp.float32(fan_in))
    w = jax.random.uniform(kw, (fan_in, fan_out), jnp.float32, -bound, bound)
    b = jax.random.uniform(kb, (1, fan_out), jnp.float32, -bound, bound)
    return w, b


def _ref_forward(x, params):
    """Pure-JAX reference with the same bf16-weight / f32-accum numerics."""
    (w1, b1, w2, b2,
     wmk, bmk, wmd, bmd, wsm, bsm, wgn, bgn,
     wcl, bcl) = params
    bf16, f32 = jnp.bfloat16, jnp.float32
    hidden = w2.shape[1]

    xb = x.astype(bf16)
    h1 = jnp.maximum(jnp.dot(xb, w1.astype(bf16),
                             preferred_element_type=f32) + b1, 0.0).astype(bf16)
    out = jnp.maximum(jnp.dot(h1, w2.astype(bf16),
                              preferred_element_type=f32) + b2, 0.0).astype(bf16)

    make_o = jnp.dot(out, wmk.astype(bf16), preferred_element_type=f32) + bmk
    model_o = jnp.dot(out, wmd.astype(bf16), preferred_element_type=f32) + bmd
    sub_o = jnp.dot(out, wsm.astype(bf16), preferred_element_type=f32) + bsm
    gen_o = jnp.dot(out, wgn.astype(bf16), preferred_element_type=f32) + bgn

    heads = jnp.concatenate([make_o, model_o, sub_o, gen_o], axis=1)
    fc = (jnp.dot(out, wcl[:hidden].astype(bf16), preferred_element_type=f32)
          + jnp.dot(heads, wcl[hidden:], preferred_element_type=f32)
          + bcl)
    return fc, make_o, model_o, sub_o, gen_o


if __name__ == "__main__":
    # Small shapes consistent with the module's forward:
    #   x      : [B, F_IN]  (flattened base features; 25088-analog)
    #   hidden : 4096-analog
    B = 8
    F_IN = 512           # analog of 25088
    HIDDEN = 256         # analog of 4096
    NUM_MAKES = 16
    NUM_MODELS = 24
    NUM_SUBMODELS = 32
    NUM_GENERATION = 8
    NUM_CLASSES = 48

    root = jax.random.PRNGKey(0)
    keys = jax.random.split(root, 8)

    x = jax.random.normal(keys[0], (B, F_IN), jnp.float32)

    w1, b1 = _init_linear(keys[1], F_IN, HIDDEN)
    w2, b2 = _init_linear(keys[2], HIDDEN, HIDDEN)
    wmk, bmk = _init_linear(keys[3], HIDDEN, NUM_MAKES)
    wmd, bmd = _init_linear(keys[4], HIDDEN, NUM_MODELS)
    wsm, bsm = _init_linear(keys[5], HIDDEN, NUM_SUBMODELS)
    wgn, bgn = _init_linear(keys[6], HIDDEN, NUM_GENERATION)
    concat_dim = HIDDEN + NUM_MAKES + NUM_MODELS + NUM_SUBMODELS + NUM_GENERATION
    wcl, bcl = _init_linear(keys[7], concat_dim, NUM_CLASSES)

    params = (w1, b1, w2, b2,
              wmk, bmk, wmd, bmd, wsm, bsm, wgn, bgn,
              wcl, bcl)

    # One-time parameter prep (casts / packing hoisted out of the forward).
    prepped = prepare_params(params)

    # Small tile targets so the demo shapes exercise a real multi-step grid
    # (layer1 grid = (2, 4), layer2 grid = (2, 2)); at real 25088/4096 shapes
    # the defaults (1792x2048 / 2048x2048) give MiB-scale double-buffered
    # weight tiles sized for every TPU generation's VMEM budget.
    outs = mtlnc_shared_fc_b_forward(x, prepped,
                                     l1_tiles=(128, 128), l2_tiles=(128, 128))
    outs = jax.block_until_ready(outs)

    refs = _ref_forward(x, params)
    for got, ref in zip(outs, refs):
        assert got.shape == ref.shape and got.dtype == ref.dtype, (got.shape, ref.shape)
        assert jnp.allclose(got, ref, rtol=2e-2, atol=2e-2), (
            float(jnp.max(jnp.abs(got - ref))))

    print("KERNEL_OK")
</pallas_src>

<mosaic_0001>
module attributes {stable_mosaic.version = 11 : i64} {
  func.func @_linear_relu_kernel(%arg0: i32, %arg1: i32, %arg2: memref<8x512xbf16, #tpu.memory_space<vmem>>, %arg3: memref<128x128xbf16, #tpu.memory_space<vmem>>, %arg4: memref<1x128xf32, #tpu.memory_space<vmem>>, %arg5: memref<8x128xbf16, #tpu.memory_space<vmem>>, %arg6: memref<8x128xf32, #tpu.memory_space<vmem>>) attributes {dimension_semantics = [#tpu.dimension_semantics<parallel>, #tpu.dimension_semantics<arbitrary>], iteration_bounds = array<i64: 2, 4>, scalar_prefetch = 0 : i64, scratch_operands = 1 : i64, tpu.core_type = #tpu.core_type<tc>, window_params = [{pipeline_mode = #tpu.pipeline_mode<synchronous>, transform_indices = @transform_0, window_bounds = array<i64: 8, 512>}, {pipeline_mode = #tpu.pipeline_mode<double_buffered>, transform_indices = @transform_1, window_bounds = array<i64: 128, 128>}, {transform_indices = @transform_2, window_bounds = array<i64: 1, 128>}, {transform_indices = @transform_3, window_bounds = array<i64: 8, 128>}]} {
    %c0_i32 = arith.constant 0 : i32
    %0 = arith.cmpi eq, %arg1, %c0_i32 : i32
    %1 = arith.extui %0 : i1 to i32
    %c0_i32_0 = arith.constant 0 : i32
    %2 = arith.cmpi ne, %1, %c0_i32_0 : i32
    scf.if %2 {
      %cst_8 = arith.constant 0.000000e+00 : f32
      %15 = vector.broadcast %cst_8 : f32 to vector<8x128xf32>
      %c0_9 = arith.constant 0 : index
      %c0_10 = arith.constant 0 : index
      %16 = vector.load %arg6[%c0_9, %c0_10] : memref<8x128xf32, #tpu.memory_space<vmem>>, vector<8x128xf32>
      tpu.vector_store %arg6[%c0_9, %c0_10], %15 {strides = array<i32>} : memref<8x128xf32, #tpu.memory_space<vmem>>, vector<8x128xf32>,
    } else {
    }
    %c128_i32 = arith.constant 128 : i32
    %3 = arith.muli %arg1, %c128_i32 : i32
    %4 = tpu.assume_multiple %3, 128 : i32
    %c0 = arith.constant 0 : index
    %c0_1 = arith.constant 0 : index
    %5 = vector.load %arg6[%c0, %c0_1] : memref<8x128xf32, #tpu.memory_space<vmem>>, vector<8x128xf32>
    %c0_2 = arith.constant 0 : index
    %6 = arith.index_cast %4 : i32 to index
    %7 = vector.load %arg2[%c0_2, %6] : memref<8x512xbf16, #tpu.memory_space<vmem>>, vector<8x128xbf16>
    %c0_3 = arith.constant 0 : index
    %c0_4 = arith.constant 0 : index
    %8 = vector.load %arg3[%c0_3, %c0_4] : memref<128x128xbf16, #tpu.memory_space<vmem>>, vector<128x128xbf16>
    %cst = arith.constant dense<0.000000e+00> : vector<8x128xf32>
    %9 = tpu.matmul %7, %8, %cst {dimension_numbers = #tpu.dot_dimension_numbers<[1], [0], [0], [1], [0, 0, 1, 1], [], []>} : vector<8x128xbf16>, vector<128x128xbf16>, vector<8x128xf32> -> vector<8x128xf32>
    %10 = arith.addf %5, %9 : vector<8x128xf32>
    %c0_5 = arith.constant 0 : index
    %c0_6 = arith.constant 0 : index
    %11 = vector.load %arg6[%c0_5, %c0_6] : memref<8x128xf32, #tpu.memory_space<vmem>>, vector<8x128xf32>
    tpu.vector_store %arg6[%c0_5, %c0_6], %10 {strides = array<i32>} : memref<8x128xf32, #tpu.memory_space<vmem>>, vector<8x128xf32>,
    %c3_i32 = arith.constant 3 : i32
    %12 = arith.cmpi eq, %arg1, %c3_i32 : i32
    %13 = arith.extui %12 : i1 to i32
    %c0_i32_7 = arith.constant 0 : i32
    %14 = arith.cmpi ne, %13, %c0_i32_7 : i32
    scf.if %14 {
      %c0_8 = arith.constant 0 : index
      %c0_9 = arith.constant 0 : index
      %15 = vector.load %arg6[%c0_8, %c0_9] : memref<8x128xf32, #tpu.memory_space<vmem>>, vector<8x128xf32>
      %c0_10 = arith.constant 0 : index
      %c0_11 = arith.constant 0 : index
      %16 = vector.load %arg4[%c0_10, %c0_11] : memref<1x128xf32, #tpu.memory_space<vmem>>, vector<1x128xf32>
      %17 = vector.broadcast %16 : vector<1x128xf32> to vector<8x128xf32>
      %18 = arith.addf %15, %17 : vector<8x128xf32>
      %cst_12 = arith.constant 0.000000e+00 : f32
      %19 = vector.broadcast %cst_12 : f32 to vector<8x128xf32>
      %20 = arith.maximumf %18, %19 : vector<8x128xf32>
      %21 = arith.truncf %20 : vector<8x128xf32> to vector<8x128xbf16>
      %c0_13 = arith.constant 0 : index
      %c0_14 = arith.constant 0 : index
      %22 = vector.load %arg5[%c0_13, %c0_14] : memref<8x128xbf16, #tpu.memory_space<vmem>>, vector<8x128xbf16>
      tpu.vector_store %arg5[%c0_13, %c0_14], %21 {strides = array<i32>} : memref<8x128xbf16, #tpu.memory_space<vmem>>, vector<8x128xbf16>,
    } else {
    }
    return
  }
  func.func @transform_0(%arg0: i32, %arg1: i32) -> (i32, i32) {
    %c0_i32 = arith.constant 0 : i32
    %c0_i32_0 = arith.constant 0 : i32
    %c0_i32_1 = arith.constant 0 : i32
    return %c0_i32, %c0_i32_0 : i32, i32
  }
  func.func @transform_1(%arg0: i32, %arg1: i32) -> (i32, i32) {
    %c0_i32 = arith.constant 0 : i32
    return %arg1, %arg0 : i32, i32
  }
  func.func @transform_2(%arg0: i32, %arg1: i32) -> (i32, i32) {
    %c0_i32 = arith.constant 0 : i32
    %c0_i32_0 = arith.constant 0 : i32
    return %c0_i32, %arg0 : i32, i32
  }
  func.func @transform_3(%arg0: i32, %arg1: i32) -> (i32, i32) {
    %c0_i32 = arith.constant 0 : i32
    %c0_i32_0 = arith.constant 0 : i32
    return %c0_i32, %arg0 : i32, i32
  }
}

</mosaic_0001>

<bundles_post_ra>
// kernel: tpu_custom_call.1
= control target key start
LH: loop header
LB: loop body
LE: loop exit
PB: predicated region body
PF: predicated region fallthrough
CT: control target
= control target key end

     0   :  { %s1182_s0 = inlined_call_operand.hbm [shape: bf16[8,512], index: 0, kind: input, shape index: {}]   ;;  %s1183_s1 = inlined_call_operand.hbm [shape: bf16[512,256], index: 1, kind: input, shape index: {}]   ;;  %s1184_s2 = inlined_call_operand.vmem [shape: f32[1,256], index: 2, kind: input, shape index: {}]   ;;  %s1185_s3 = inlined_call_operand.hbm [shape: bf16[8,256], index: 3, kind: output, shape index: {}]  }
   0x1   :  { %1197 = sst [smem:[#allocation17_spill]] %s1182_s0 }
   0x2   :  { %8 = vsyncpa [#allocation4], 0 }
   0x3   :  { %9 = vsyncpa [#allocation7], 0 }
   0x4   :  { %11 = vsyncpa [#allocation7 + $0x1], 0 }
   0x5   :  { %12 = vsyncpa [#allocation5], 0 }
   0x6   :  { %14 = vsyncpa [#allocation5 + $0x1], 0  ;;  %s890_s12 = smov 0   ;;  %s892_s13 = smov 0  }
   0x7   :  { %s894_s14 = smov 0   ;;  %s896_s15 = smov 0  }
   0x8   :  { %s898_s16 = smov 0   ;;  %s900_s17 = smov 0  }
   0x9   :  { %s902_s18 = smov 0   ;;  %s904_s19 = smov 0  }
   0xa   :  { %s906_s20 = smov 0   ;;  %s908_s21 = smov 0  }
   0xb   :  { %s910_s22 = smov 0  }
   0xc LB: > { %1198 = sst [smem:[#allocation12_spill]] %s819_s12  ;;  %s488_s23 = sadd.s32 4294967295, %s859_s22   ;;  %s859_s22 = sphi %s910_s22, %s20_s22   ;;  %s855_s21 = sphi %s908_s21, %s1232_s21   ;;  %s851_s20 = sphi %s906_s20, %s1223_s20   ;;  %s847_s19 = sphi %s904_s19, %s1231_s19   ;;  %s843_s18 = sphi %s902_s18, %s1222_s18   ;;  %s839_s17 = sphi %s900_s17, %s1230_s17   ;;  %s835_s16 = sphi %s898_s16, %s1229_s16   ;;  %s831_s15 = sphi %s896_s15, %s1228_s15   ;;  %s827_s14 = sphi %s894_s14, %s1227_s14   ;;  %s823_s13 = sphi %s892_s13, %s1226_s13   ;;  %s819_s12 = sphi %s890_s12, %s1225_s12  }
   0xd   : > { %1199 = sst [smem:[#allocation13_spill]] %s851_s20  ;;  %s489_s24 = sadd.s32 4294967294, %s859_s22  }
   0xe   : > { %p69_p0 = scmp.ne.s32.totalorder %s839_s17, %s835_s16  ;;  %p70_p1 = scmp.eq.s32.totalorder %s859_s22, 0 }
   0xf   : > { %p75_p2 = scmp.ne.s32.totalorder %s835_s16, %s831_s15  ;;  %p950_p3 = scmp.eq.s32.totalorder %s488_s23, 0 }
  0x10   : > { %p955_p4 = por %p70_p1, %p69_p0  ;;  %p124_p5 = scmp.ne.s32.totalorder %s827_s14, %s823_s13 }
  0x11   : > { %s1200_s26 = scalar_select %p950_p3, 1, 0 }
  0x12   : > { %p963_p6 = por %p950_p3, %p75_p2  ;;  %p125_p7 = scmp.eq.s32.totalorder %s488_s23, 7 }
  0x13   : > { %p130_p8 = scmp.ne.s32.totalorder %s823_s13, %s819_s12  ;;  %p131_p9 = scmp.eq.s32.totalorder %s489_s24, 7 }
  0x14   : > { %s1202_s29 = scalar_select %p963_p6, 1, 0 }
  0x15   : > { %p969_p10 = por %p125_p7, %p124_p5  ;;  %p490_p11 = scmp.ge.s32.totalorder %s859_s22, 1 }
  0x16   : > { %p974_p12 = por %p131_p9, %p130_p8  ;;  %p138_p13 = scmp.lt.s32.totalorder %s859_s22, 9 }
  0x17   : > { %s1203_s30 = scalar_select %p969_p10, 1, 0 }
  0x18   : > { %s1204_s4 = scalar_select %p974_p12, 1, 0 }
  0x19   : > { %p979_p0 = pnand %p490_p11, %p138_p13  ;;  %s861_s6 = smov [#allocation3]  }
  0x1a   : > { %1205 = sst [smem:[#allocation14_spill]] %s1204_s4  ;;  %s151_s7 = sshll.u32 %s861_s6, 4  ;;  %s152_s7 = int_to_ptr.vmem [resolvable:$true] %s151_s7 }
  0x1b   : > { %s1206_s5 = scalar_select %p979_p0, 1, 0 }
  0x1c   : > { %p556_p1 = pneg %p979_p0  ;;  %p569_p2 = scmp.lt.s32.totalorder %s859_s22, 8 }
  0x1d   : > { %s1209_s0 = sld [smem:[#allocation17_spill]] }
  0x1e   : > { %p988_p5 = pnand %p556_p1, %p950_p3  ;;  %p994_p7 = pnand %p569_p2, %p955_p4 }
  0x20   : > { %s1208_s9 = scalar_select %p994_p7, 1, 0 }
  0x21   : > { %p677_p9 = pneg %p988_p5 }
  0x23   : > { %s675_s15 = scalar_lea.hbm %s1209_s0, 256 }
  0x24   : > { %p676_p8 = scmp.ne.s32.totalorder %s1209_s0, %s675_s15  ;;  %p682_p1 = scmp.lt.u32.totalorder %s675_s15, %s1209_s0 }
  0x26   : > { %p678_p11 = pnand %p677_p9, %p676_p8 }
  0x28   : > { %p679_p13 = pneg %p678_p11 }
  0x2a   : > { %p684_p4 = pnand %p682_p1, %p679_p13 }
  0x2c   : > { %687 = shalt.err (!%p684_p4)
}
  0x2d   : > { %s688_s28 = scalar_lea.vmem %s152_s7, 256  ;;  %p696_p6 = scmp.lt.s32.totalorder %s152_s7, %s152_s7 }
  0x2e   : > { %p689_p2 = scmp.ne.s32.totalorder %s152_s7, %s688_s28  ;;  %p697_p3 = scmp.lt.s32.totalorder %s688_s28, %s688_s28 }
  0x30   : > { %p691_p12 = pnand %p689_p2, %p677_p9  ;;  %p698_p0 = por %p697_p3, %p696_p6 }
  0x32   : > { %p692_p10 = pneg %p691_p12 }
  0x34   : > { %p699_p7 = pnand %p698_p0, %p692_p10 }
  0x36   : > { %702 = shalt.err (!%p699_p7)
}
  0x37   : > { %559 = dma.hbm_to_vmem [thread:$0]  (!%p988_p5), %s1209_s0, 256, %s152_s7, [#allocation4]  }
  0x38   : > { %s29_s25 = sadd.s32 1, %s851_s20  ;;  %s32_s15 = sadd.s32 1, %s855_s21 }
  0x39   : > { %p30_p12 = scmp.ge.s32.totalorder %s29_s25, 4  ;;  %s162_s23 = sand.u32 1, %s839_s17  }
  0x3a   : > { %s493_s24 = sshll.u32 %s162_s23, 6  ;;  %s518_s6 = sshll.u32 %s851_s20, 5 }
  0x3b   : > { %s1234_s25 = smov (%p30_p12, %s29_s25), 0  ;;  %s1236_s15 = smov (!%p30_p12, %s32_s15), %s855_s21 }
  0x3c   : > { %1210 = sst [smem:[#allocation15_spill]] %s1234_s25  ;;  %s57_s8 = ssub.s32 %s851_s20, %s1234_s25 }
  0x3d   : > { %p34_p3 = scmp.ge.s32.totalorder %s1236_s15, 2  ;;  %s172_s28 = sadd.s32 %s855_s21, %s518_s6 }
  0x3e   : > { %s166_s7 = scalar_lea.vmem [#allocation6], %s493_s24  ;;  %s496_s11 = sshll.u32 %s172_s28, 6 }
  0x3f   : > { %s175_s10 = sshll.u32 %s166_s7, 4  ;;  %s1238_s15 = smov (%p34_p3, %s1236_s15), 0  ;;  %s1026_s10 = int_to_ptr.vmem [resolvable:$true] %s175_s10 }
  0x40   : > { %1211 = sst [smem:[#allocation16_spill]] %s1238_s15  ;;  %s58_s27 = ssub.s32 %s855_s21, %s1238_s15 }
  0x41   : > { %s1033_s12 = scalar_lea.hbm %s1183_s1, %s496_s11  ;;  %s59_s6 = sor.u32 %s58_s27, %s57_s8 }
  0x42   : > { %p112_p6 = scmp.eq.s32.totalorder %s58_s27, 0  ;;  %p60_p10 = scmp.eq.s32.totalorder %s59_s6, 0 }
  0x43   : > { %s1212_s24 = sadd.s32 1, %s827_s14  ;;  %s1213_s25 = sadd.s32 1, %s839_s17 }
  0x44   : > { %s1038_s7 = scalar_select %p112_p6, %s827_s14, %s1212_s24  }
  0x45   : > { %s1043_s28 = scalar_select %p60_p10, %s839_s17, %s1213_s25  }
  0x46   : > { %s1045_s20 = scalar_lea.sflag [#allocation7], %s162_s23  ;;  %s703_s15 = scalar_lea.hbm %s1033_s12, 1024 }
  0x47   : > { %p704_p0 = scmp.ne.s32.totalorder %s1033_s12, %s703_s15  ;;  %p1214_p5 = scmp.ne.s32.totalorder %s1208_s9, 0 }
  0x48   : > { %s708_s27 = scalar_lea.hbm %s1183_s1, 8192  ;;  %p709_p11 = scmp.lt.u32.totalorder %s1033_s12, %s1183_s1 }
  0x49   : > { %p705_p7 = pneg %p1214_p5  ;;  %p710_p13 = scmp.lt.u32.totalorder %s708_s27, %s703_s15 }
  0x4a   : > { %p712_p4 = scmp.lt.u32.totalorder %s703_s15, %s1033_s12 }
  0x4b   : > { %p706_p8 = pnand %p705_p7, %p704_p0  ;;  %p711_p1 = por %p710_p13, %p709_p11 }
  0x4d   : > { %p707_p9 = pneg %p706_p8  ;;  %p713_p2 = por %p712_p4, %p711_p1 }
  0x4f   : > { %p714_p12 = pnand %p713_p2, %p707_p9 }
  0x51   : > { %717 = shalt.err (!%p714_p12)
}
  0x52   : > { %s718_s25 = scalar_lea.vmem %s1026_s10, 1024  ;;  %s862_s23 = smov [#allocation6]  }
  0x53   : > { %p719_p3 = scmp.ne.s32.totalorder %s1026_s10, %s718_s25  ;;  %s723_s6 = sshll.u32 %s862_s23, 4  ;;  %s724_s6 = int_to_ptr.vmem [resolvable:$false] %s723_s6 }
  0x54   : > { %s725_s24 = scalar_lea.vmem %s724_s6, 2048  ;;  %p726_p0 = scmp.lt.s32.totalorder %s1026_s10, %s724_s6 }
  0x55   : > { %p721_p6 = pnand %p719_p3, %p705_p7  ;;  %p727_p8 = scmp.lt.s32.totalorder %s725_s24, %s718_s25 }
  0x57   : > { %p722_p10 = pneg %p721_p6  ;;  %p728_p11 = por %p727_p8, %p726_p0 }
  0x59   : > { %p729_p13 = pnand %p728_p11, %p722_p10 }
  0x5b   : > { %732 = shalt.err (!%p729_p13)
}
  0x5c   : > { %s863_s15 = smov 128   ;;  %s864_s0 = smov 64  }
  0x5d   : > { %s865_s4 = smov 4   ;;  %p1215_p7 = scmp.ne.s32.totalorder %s1206_s5, 0 }
  0x5e   : > { %563 = dma.hbm_to_vmem [thread:$0]  (!%p1214_p5), %s1033_s12, 1024, %s1026_s10, %s1045_s20, %s863_s15, %s864_s0, %s865_s4  }
  0x5f   : > { %193 = sbr.rel (%p1215_p7) target bundleno = 404 (0x194), region = 32  ;;  %p1216_p9 = scmp.ne.s32.totalorder (!%p1215_p7), %s1200_s26, 0 }
  0x66   : > { %806 = dma.done.wait (%p1216_p9), [#allocation4], 256  }
  0x67   : > { %808 = vsyncadd (%p1216_p9), [#allocation4], 4294967040  ;;  %s199_s27 = sand.u32 1, %s835_s16   ;;  %p1217_p1 = scmp.ne.s32.totalorder %s1202_s29, 0 }
  0x68   : > { %s499_s8 = sshll.u32 %s199_s27, 6  ;;  %s200_s11 = scalar_lea.sflag [#allocation7], %s199_s27 }
  0x69   : > { %s1080_s25 = scalar_lea.vmem [#allocation6], %s499_s8 }
  0x6a   : > { %810 = dma.done.wait (%p1217_p1), %s200_s11, 1024  }
  0x6b   : > { %812 = vsyncadd (%p1217_p1), %s200_s11, 4294966272  ;;  %s226_s12 = sand.u32 1, %s823_s13   ;;  %p230_p5 = scmp.lt.s32.totalorder %s847_s19, 1 }
  0x6c   : > { %s1090_s20 = sshll.u32 %s226_s12, 2  ;;  %p501_p4 = scmp.ne.s32.totalorder %s843_s18, 0 }
  0x6d   : > { %s1093_s26 = scalar_select %p230_p5, %s847_s19, 1 }
  0x6e   : > { %s228_s23 = scalar_lea.vmem [#allocation8], %s1090_s20  ;;  %237 = sbr.rel (%p501_p4) target bundleno = 117 (0x75), region = 44  ;;  %v866_v0 = vmov (!%p501_p4), 0.0  }
  0x6f   : > { %s232_s10 = scalar_lea.vmem %s1184_s2, %s1093_s26  ;;  %238 = vst [vmem:[#allocation2] sm:$0xff] (!%p501_p4), %v866_v0 }
  0x75 PF: > { %v667_v1 = vld [vmem:[%s1080_s25] sm:$0xff]   ;;  %v867_v2 = vmov 0.0   ;;  %v668_v3 = vld [vmem:[%s1080_s25 + $0x8] sm:$0xff]   ;;  %vm868_vm0 = vmmov 0   ;;  %v669_v4 = vld [vmem:[%s1080_s25 + $0x10] sm:$0xff]   ;;  %s502_s29 = sshll.u32 %s843_s18, 7 }
  0x76   : > { %528 = vmatprep.subr.bf16.mxu0 %v867_v2  ;;  %544 = vmatprep.mubr.msk.bf16.mxu0 %vm868_vm0, %v867_v2  ;;  %v670_v5 = vld [vmem:[%s1080_s25 + $0x18] sm:$0xff]   ;;  %v671_v6 = vld [vmem:[%s1080_s25 + $0x20] sm:$0xff]   ;;  %v672_v7 = vld [vmem:[%s1080_s25 + $0x28] sm:$0xff]   ;;  %s241_s6 = sshra.s32 %s502_s29, 7  ;;  %p512_p2 = scmp.ne.s32.totalorder %s843_s18, 3 }
  0x77   : > { %529 = vmatpush3.bf16.msra.mxu0 %v667_v1  ;;  %v673_v8 = vld [vmem:[%s1080_s25 + $0x30] sm:$0xff]   ;;  %s503_s24 = sshll.u32 %s241_s6, 2  ;;  %v674_v9 = vld [vmem:[%s1080_s25 + $0x38] sm:$0xff]   ;;  %v240_v11 = vld [vmem:[#allocation2] sm:$0xff] }
  0x78   : > { %530 = vmatprep.subr.bf16.mxu0 %v867_v2  ;;  %s244_s15 = scalar_lea.vmem [#allocation3], %s503_s24  ;;  %v513_v18 = vld [vmem:[%s232_s10] ss:$0 sm:$0xff] (!%p512_p2) }
  0x79   : > { %v245_v10 = vld [vmem:[%s244_s15] sm:$0xf] }
  0x7b   : > { %531 = vmatpush3.bf16.msra.mxu0 %v668_v3 }
  0x7c   : > { %532 = vmatprep.subr.bf16.mxu0 %v867_v2 }
  0x7f   : > { %533 = vmatpush3.bf16.msra.mxu0 %v669_v4 }
  0x80   : > { %534 = vmatprep.subr.bf16.mxu0 %v867_v2 }
  0x83   : > { %535 = vmatpush3.bf16.msra.mxu0 %v670_v5 }
  0x84   : > { %536 = vmatprep.subr.bf16.mxu0 %v867_v2 }
  0x87   : > { %537 = vmatpush3.bf16.msra.mxu0 %v671_v6 }
  0x88   : > { %538 = vmatprep.subr.bf16.mxu0 %v867_v2 }
  0x8b   : > { %539 = vmatpush3.bf16.msra.mxu0 %v672_v7 }
  0x8c   : > { %540 = vmatprep.subr.bf16.mxu0 %v867_v2 }
  0x8f   : > { %541 = vmatpush3.bf16.msra.mxu0 %v673_v8 }
  0x90   : > { %542 = vmatprep.subr.bf16.mxu0 %v867_v2 }
  0x93   : > { %543 = vmatpush3.bf16.msra.mxu0 %v674_v9 }
  0x96   : > { %545 = vmatmul.mubr.bf16.vlgmr.msra.gmra.mrb[0].mxu0 %v245_v10 }
 0x166   : > { %355 = sbr.rel (%p512_p2) target bundleno = 379 (0x17b), region = 48 }
 0x169   : > { %v344_v12 = vpop.f32.mrb[0].mxu0 }
 0x16a   : > { %v350_v13 = vadd.f32 %v344_v12, %v240_v11  ;;  %v546_v14 = vpop.f32.mrb[1].mxu0 }
 0x16b   : > { %v347_v15 = vpop.f32.mrb[2].mxu0 }
 0x16c   : > { %351 = vst [vmem:[#allocation2] sm:$0xff] %v350_v13  ;;  %v547_v16 = vpop.f32.mrb[3].mxu0 }
 0x173   : > { %v356_v17 = vld [vmem:[#allocation2] sm:$0xff] }
 0x174   : > { %v364_v19 = vadd.f32 %v513_v18, %v356_v17 }
 0x176   : > { %v365_v20 = vmax.f32 %v364_v19, 0.0 }
 0x178   : > { %v366_v21 = vpack.c.bf16 %v365_v20, %v365_v20 }
 0x17a   : > { %367 = vst [vmem:[%s228_s23] sm:$0xf] %v366_v21 }
 0x17b PF: > { %s515_s18 = sshll.u32 %s847_s19, 6  ;;  %s382_s25 = sshll.u32 %s228_s23, 4  ;;  %s383_s25 = int_to_ptr.vmem [resolvable:$true] %s382_s25 }
 0x17c   : > { %s1122_s11 = scalar_lea.hbm %s1185_s3, %s515_s18  ;;  %s369_s26 = scalar_lea.sflag [#allocation5], %s226_s12 }
 0x17d   : > { %s733_s5 = scalar_lea.vmem %s383_s25, 64  ;;  %p1218_p3 = scmp.ne.s32.totalorder %s1203_s30, 0 }
 0x17e   : > { %p734_p12 = scmp.ne.s32.totalorder %s383_s25, %s733_s5  ;;  %s869_s9 = smov [#allocation8]  }
 0x17f   : > { %s737_s10 = sshll.u32 %s869_s9, 4  ;;  %s738_s10 = int_to_ptr.vmem [resolvable:$false] %s737_s10 }
 0x180   : > { %p735_p6 = pnand %p734_p12, %p1218_p3  ;;  %s739_s29 = scalar_lea.vmem %s738_s10, 128 }
 0x181   : > { %p740_p0 = scmp.lt.s32.totalorder %s383_s25, %s738_s10  ;;  %p741_p8 = scmp.lt.s32.totalorder %s739_s29, %s733_s5 }
 0x182   : > { %p736_p10 = pneg %p735_p6 }
 0x183   : > { %p742_p11 = por %p741_p8, %p740_p0 }
 0x185   : > { %p743_p13 = pnand %p742_p11, %p736_p10 }
 0x187   : > { %746 = shalt.err (!%p743_p13)
}
 0x188   : > { %s747_s19 = scalar_lea.hbm %s1122_s11, 64  ;;  %s751_s23 = scalar_lea.hbm %s1185_s3, 128 }
 0x189   : > { %p748_p7 = scmp.ne.s32.totalorder %s1122_s11, %s747_s19  ;;  %p752_p5 = scmp.lt.u32.totalorder %s1122_s11, %s1185_s3 }
 0x18a   : > { %p753_p4 = scmp.lt.u32.totalorder %s751_s23, %s747_s19  ;;  %p755_p12 = scmp.lt.u32.totalorder %s747_s19, %s1122_s11 }
 0x18b   : > { %p749_p9 = pnand %p748_p7, %p1218_p3 }
 0x18c   : > { %p754_p2 = por %p753_p4, %p752_p5 }
 0x18d   : > { %p750_p1 = pneg %p749_p9 }
 0x18e   : > { %p756_p6 = por %p755_p12, %p754_p2 }
 0x190   : > { %p757_p10 = pnand %p756_p6, %p750_p1 }
 0x192   : > { %760 = shalt.err (!%p757_p10)
}
 0x193   : > { %554 = dma.vmem_to_hbm [thread:$0]  (%p1218_p3), %s383_s25, 64, %s1122_s11, %s369_s26  }
 0x194 PF: > { %s1219_s15 = sld [smem:[#allocation12_spill]]  ;;  %s1220_s0 = sld [smem:[#allocation14_spill]] }
 0x195   : > { %p571_p0 = scmp.ge.s32.totalorder %s859_s22, 2 }
 0x19a   : > { %s394_s4 = sand.u32 1, %s1219_s15   ;;  %p1221_p8 = scmp.ne.s32.totalorder %s1220_s0, 0 }
 0x19b   : > { %s395_s18 = scalar_lea.sflag [#allocation5], %s394_s4 }
 0x19c   : > { %p565_p11 = pnand %p571_p0, %p1221_p8 }
 0x19e   : > { %814 = dma.done.wait (!%p565_p11), %s395_s18, 64  }
 0x19f   : > { %816 = vsyncadd (!%p565_p11), %s395_s18, 4294967232  ;;  %s20_s22 = sadd.s32 1, %s859_s22   ;;  %s1222_s18 = sld [smem:[#allocation13_spill]] }
 0x1a0   : > { %p17_p13 = scmp.ge.s32.totalorder %s20_s22, 10   ;;  %s1223_s20 = sld [smem:[#allocation15_spill]] }
 0x1a1   : > { %s1224_s30 = sld [smem:[#allocation16_spill]]  ;;  %s1225_s12 = smov %s823_s13 }
 0x1a2   : > { %s1226_s13 = smov %s827_s14  ;;  %s1227_s14 = smov %s1038_s7 }
 0x1a3   : > { %s1228_s15 = smov %s835_s16  ;;  %s1229_s16 = smov %s839_s17 }
 0x1a4   : > { %s1230_s17 = smov %s1043_s28  ;;  %s1231_s19 = smov %s855_s21 }
 0x1a5   :  { %19 = sbr.rel (!%p17_p13) target bundleno = 12 (0xc), region = 94 }
 0x1a7   : > { %s1232_s21 = smov %s1224_s30 }
 0x1ac   :  { %400 = vsyncpa [#allocation4], 1 }
 0x1ad   :  { %402 = vsyncpa [#allocation4 + $0x1], 1 }
 0x1ae   :  { %403 = vsyncpa [#allocation7], 1 }
 0x1af   :  { %405 = vsyncpa [#allocation7 + $0x1], 1 }
 0x1b0   :  { %406 = vsyncpa [#allocation5], 1 }
 0x1b1   :  { %408 = vsyncpa [#allocation5 + $0x1], 1 }

</bundles_post_ra>
